<compile_context>
chip_gen: v6e
topology: v6e:2x2x1
jax: 0.10.0
libtpu: 0.0.40
codegen_flags: <defaults>
</compile_context>

<pallas_src>
import functools

import jax
import jax.numpy as jnp
from jax import lax
from jax.experimental import pallas as pl
from jax.experimental.pallas import tpu as pltpu


_INV_SQRT2 = 0.7071067811865476


def _falcon_mlp_kernel(x_ref, w1_ref, w2_ref, o_ref, acc_ref):
    # x_ref:  (tm, hidden)   activation row tile (native dtype)
    # w1_ref: (hidden, tf)   dense_h_to_4h weight column block (native dtype)
    # w2_ref: (tf, hidden)   dense_4h_to_h weight row block   (native dtype)
    # o_ref:  (tm, hidden)   output tile (resident across the ffn grid axis)
    # acc_ref:(tm, hidden)   f32 accumulator scratch
    j = pl.program_id(1)

    @pl.when(j == 0)
    def _():
        acc_ref[...] = jnp.zeros_like(acc_ref)

    # dense_h_to_4h (no bias in Falcon-7B); MXU consumes native dtype, accumulates f32.
    h = jnp.dot(x_ref[...], w1_ref[...], preferred_element_type=jnp.float32)

    # Exact GELU (erf formulation, matches torch.nn.GELU() default) in f32.
    # (Could switch to tanh-approx GELU to move work VPU->EUP if accuracy allows.)
    h = 0.5 * h * (1.0 + lax.erf(h * jnp.float32(_INV_SQRT2)))

    # dense_4h_to_h partial product for this ffn block, accumulated in f32.
    acc_ref[...] += jnp.dot(h.astype(w2_ref.dtype), w2_ref[...],
                            preferred_element_type=jnp.float32)

    @pl.when(j == pl.num_programs(1) - 1)
    def _():
        o_ref[...] = acc_ref[...].astype(o_ref.dtype)


def _round_up(a, b):
    return ((a + b - 1) // b) * b


@functools.partial(jax.jit, static_argnames=("tm", "tf", "vmem_limit_bytes"))
def falcon_mlp(x, w1, w2, *, tm=256, tf=1024, vmem_limit_bytes=64 * 1024 * 1024):
    """Falcon MLP forward.

    x:  [batch, seq, hidden]
    w1: [hidden, ffn]  (dense_h_to_4h weight, transposed from PyTorch layout)
    w2: [ffn, hidden]  (dense_4h_to_h weight, transposed from PyTorch layout)
    """
    batch, seq, hidden = x.shape
    ffn = w1.shape[1]
    M = batch * seq

    # --- choose tiles that respect the (8, 128) constraint and the problem size ---
    # Row tile: clamp to the (8-rounded) number of rows; hidden stays full-extent.
    tm_eff = min(tm, _round_up(M, 8))
    M_pad = _round_up(M, tm_eff)
    # ffn tile: either the full ffn extent or a multiple of 128.
    if tf >= ffn:
        tf_eff = ffn
    else:
        tf_eff = max(128, (tf // 128) * 128)
    ffn_pad = _round_up(ffn, tf_eff)

    x2d = x.reshape(M, hidden)
    if M_pad != M:
        x2d = jnp.pad(x2d, ((0, M_pad - M), (0, 0)))
    w1p, w2p = w1, w2
    if ffn_pad != ffn:
        # Zero-padding the ffn axis is exact: gelu(0) == 0, so padded columns of h
        # contribute nothing to the second matmul.
        w1p = jnp.pad(w1, ((0, 0), (0, ffn_pad - ffn)))
        w2p = jnp.pad(w2, ((0, ffn_pad - ffn), (0, 0)))

    grid = (M_pad // tm_eff, ffn_pad // tf_eff)

    itemsize = jnp.dtype(x.dtype).itemsize
    cost = pl.CostEstimate(
        flops=2 * M * hidden * ffn * 2,          # two matmuls
        transcendentals=M * ffn,                 # erf per intermediate element
        bytes_accessed=(w1.size + w2.size) * jnp.dtype(w1.dtype).itemsize
        + 2 * M * hidden * itemsize,             # read x, write out
    )

    out2d = pl.pallas_call(
        _falcon_mlp_kernel,
        out_shape=jax.ShapeDtypeStruct((M_pad, hidden), x.dtype),
        grid_spec=pltpu.PrefetchScalarGridSpec(
            num_scalar_prefetch=0,
            grid=grid,
            in_specs=[
                pl.BlockSpec((tm_eff, hidden), lambda i, j: (i, 0)),   # x row tile
                pl.BlockSpec((hidden, tf_eff), lambda i, j: (0, j)),   # W1 column block
                pl.BlockSpec((tf_eff, hidden), lambda i, j: (j, 0)),   # W2 row block
            ],
            out_specs=pl.BlockSpec((tm_eff, hidden), lambda i, j: (i, 0)),
            scratch_shapes=[pltpu.VMEM((tm_eff, hidden), jnp.float32)],
        ),
        compiler_params=pltpu.CompilerParams(
            dimension_semantics=("parallel", "arbitrary"),
            vmem_limit_bytes=vmem_limit_bytes,
        ),
        cost_estimate=cost,
    )(x2d, w1p, w2p)

    if M_pad != M:
        out2d = out2d[:M]
    return out2d.reshape(batch, seq, hidden)


def falcon_mlp_reference(x, w1, w2):
    h = jnp.einsum("bsh,hf->bsf", x.astype(jnp.float32), w1.astype(jnp.float32))
    h = 0.5 * h * (1.0 + lax.erf(h / jnp.sqrt(jnp.float32(2.0))))
    return jnp.einsum("bsf,fh->bsh", h, w2.astype(jnp.float32)).astype(x.dtype)


if __name__ == "__main__":
    # Small shapes consistent with the Falcon MLP forward (hidden -> 4*hidden -> hidden)
    batch, seq, hidden = 2, 8, 32
    ffn = 4 * hidden  # 128

    key = jax.random.PRNGKey(0)
    kx, kw1, kw2 = jax.random.split(key, 3)

    x = jax.random.normal(kx, (batch, seq, hidden), dtype=jnp.float32)
    # Deterministic synthetic weights (PyTorch layout would be [out, in]; we store [in, out]).
    w1 = jax.random.normal(kw1, (hidden, ffn), dtype=jnp.float32) * 0.02
    w2 = jax.random.normal(kw2, (ffn, hidden), dtype=jnp.float32) * 0.02

    out = falcon_mlp(x, w1, w2)
    out = jax.block_until_ready(out)

    ref = falcon_mlp_reference(x, w1, w2)
    assert out.shape == (batch, seq, hidden)
    assert jnp.allclose(out, ref, atol=1e-4, rtol=1e-4), "mismatch vs reference"

    print("KERNEL_OK")
</pallas_src>

<mosaic_0001>
module attributes {stable_mosaic.version = 11 : i64} {
  func.func @_falcon_mlp_kernel(%arg0: i32, %arg1: i32, %arg2: memref<16x32xf32, #tpu.memory_space<vmem>>, %arg3: memref<32x128xf32, #tpu.memory_space<vmem>>, %arg4: memref<128x32xf32, #tpu.memory_space<vmem>>, %arg5: memref<16x32xf32, #tpu.memory_space<vmem>>, %arg6: memref<16x32xf32, #tpu.memory_space<vmem>>) attributes {dimension_semantics = [#tpu.dimension_semantics<parallel>, #tpu.dimension_semantics<arbitrary>], iteration_bounds = array<i64: 1, 1>, scalar_prefetch = 0 : i64, scratch_operands = 1 : i64, tpu.core_type = #tpu.core_type<tc>, window_params = [{transform_indices = @transform_0, window_bounds = array<i64: 16, 32>}, {transform_indices = @transform_1, window_bounds = array<i64: 32, 128>}, {transform_indices = @transform_2, window_bounds = array<i64: 128, 32>}, {transform_indices = @transform_3, window_bounds = array<i64: 16, 32>}]} {
    %c0_i32 = arith.constant 0 : i32
    %0 = arith.cmpi eq, %arg1, %c0_i32 : i32
    %1 = arith.extui %0 : i1 to i32
    %c0_i32_0 = arith.constant 0 : i32
    %2 = arith.cmpi ne, %1, %c0_i32_0 : i32
    scf.if %2 {
      %cst_16 = arith.constant 0.000000e+00 : f32
      %22 = vector.broadcast %cst_16 : f32 to vector<16x32xf32>
      %c0_17 = arith.constant 0 : index
      %c0_18 = arith.constant 0 : index
      %23 = vector.load %arg6[%c0_17, %c0_18] : memref<16x32xf32, #tpu.memory_space<vmem>>, vector<16x32xf32>
      tpu.vector_store %arg6[%c0_17, %c0_18], %22 {strides = array<i32>} : memref<16x32xf32, #tpu.memory_space<vmem>>, vector<16x32xf32>,
    } else {
    }
    %c0 = arith.constant 0 : index
    %c0_1 = arith.constant 0 : index
    %3 = vector.load %arg2[%c0, %c0_1] : memref<16x32xf32, #tpu.memory_space<vmem>>, vector<16x32xf32>
    %c0_2 = arith.constant 0 : index
    %c0_3 = arith.constant 0 : index
    %4 = vector.load %arg3[%c0_2, %c0_3] : memref<32x128xf32, #tpu.memory_space<vmem>>, vector<32x128xf32>
    %cst = arith.constant dense<0.000000e+00> : vector<16x128xf32>
    %5 = tpu.matmul %3, %4, %cst {dimension_numbers = #tpu.dot_dimension_numbers<[1], [0], [0], [1], [0, 0, 1, 1], [], []>} : vector<16x32xf32>, vector<32x128xf32>, vector<16x128xf32> -> vector<16x128xf32>
    %cst_4 = arith.constant 5.000000e-01 : f32
    %6 = vector.broadcast %cst_4 : f32 to vector<16x128xf32>
    %7 = arith.mulf %6, %5 : vector<16x128xf32>
    %cst_5 = arith.constant 0.707106769 : f32
    %8 = vector.broadcast %cst_5 : f32 to vector<16x128xf32>
    %9 = arith.mulf %5, %8 : vector<16x128xf32>
    %10 = math.erf %9 : vector<16x128xf32>
    %cst_6 = arith.constant 1.000000e+00 : f32
    %11 = vector.broadcast %cst_6 : f32 to vector<16x128xf32>
    %12 = arith.addf %11, %10 : vector<16x128xf32>
    %13 = arith.mulf %7, %12 : vector<16x128xf32>
    %c0_7 = arith.constant 0 : index
    %c0_8 = arith.constant 0 : index
    %14 = vector.load %arg6[%c0_7, %c0_8] : memref<16x32xf32, #tpu.memory_space<vmem>>, vector<16x32xf32>
    %c0_9 = arith.constant 0 : index
    %c0_10 = arith.constant 0 : index
    %15 = vector.load %arg4[%c0_9, %c0_10] : memref<128x32xf32, #tpu.memory_space<vmem>>, vector<128x32xf32>
    %cst_11 = arith.constant dense<0.000000e+00> : vector<16x32xf32>
    %16 = tpu.matmul %13, %15, %cst_11 {dimension_numbers = #tpu.dot_dimension_numbers<[1], [0], [0], [1], [0, 0, 1, 1], [], []>} : vector<16x128xf32>, vector<128x32xf32>, vector<16x32xf32> -> vector<16x32xf32>
    %17 = arith.addf %14, %16 : vector<16x32xf32>
    %c0_12 = arith.constant 0 : index
    %c0_13 = arith.constant 0 : index
    %18 = vector.load %arg6[%c0_12, %c0_13] : memref<16x32xf32, #tpu.memory_space<vmem>>, vector<16x32xf32>
    tpu.vector_store %arg6[%c0_12, %c0_13], %17 {strides = array<i32>} : memref<16x32xf32, #tpu.memory_space<vmem>>, vector<16x32xf32>,
    %c0_i32_14 = arith.constant 0 : i32
    %19 = arith.cmpi eq, %arg1, %c0_i32_14 : i32
    %20 = arith.extui %19 : i1 to i32
    %c0_i32_15 = arith.constant 0 : i32
    %21 = arith.cmpi ne, %20, %c0_i32_15 : i32
    scf.if %21 {
      %c0_16 = arith.constant 0 : index
      %c0_17 = arith.constant 0 : index
      %22 = vector.load %arg6[%c0_16, %c0_17] : memref<16x32xf32, #tpu.memory_space<vmem>>, vector<16x32xf32>
      %c0_18 = arith.constant 0 : index
      %c0_19 = arith.constant 0 : index
      %23 = vector.load %arg5[%c0_18, %c0_19] : memref<16x32xf32, #tpu.memory_space<vmem>>, vector<16x32xf32>
      tpu.vector_store %arg5[%c0_18, %c0_19], %22 {strides = array<i32>} : memref<16x32xf32, #tpu.memory_space<vmem>>, vector<16x32xf32>,
    } else {
    }
    return
  }
  func.func @transform_0(%arg0: i32, %arg1: i32) -> (i32, i32) {
    %c0_i32 = arith.constant 0 : i32
    %c0_i32_0 = arith.constant 0 : i32
    return %arg0, %c0_i32 : i32, i32
  }
  func.func @transform_1(%arg0: i32, %arg1: i32) -> (i32, i32) {
    %c0_i32 = arith.constant 0 : i32
    %c0_i32_0 = arith.constant 0 : i32
    return %c0_i32, %arg1 : i32, i32
  }
  func.func @transform_2(%arg0: i32, %arg1: i32) -> (i32, i32) {
    %c0_i32 = arith.constant 0 : i32
    %c0_i32_0 = arith.constant 0 : i32
    return %arg1, %c0_i32 : i32, i32
  }
  func.func @transform_3(%arg0: i32, %arg1: i32) -> (i32, i32) {
    %c0_i32 = arith.constant 0 : i32
    %c0_i32_0 = arith.constant 0 : i32
    return %arg0, %c0_i32 : i32, i32
  }
}

</mosaic_0001>

<bundles_post_ra>
// kernel: falcon_mlp.1
= control target key start
LH: loop header
LB: loop body
LE: loop exit
PB: predicated region body
PF: predicated region fallthrough
CT: control target
= control target key end

     0   :  { %vm19_vm0 = vcmask 261120   ;;  %s443_s0 = inlined_call_operand.vmem [shape: f32[16,32], index: 0, kind: input, shape index: {}]   ;;  %s444_s1 = inlined_call_operand.vmem [shape: f32[32,128], index: 1, kind: input, shape index: {}]   ;;  %s445_s2 = inlined_call_operand.vmem [shape: f32[128,32], index: 2, kind: input, shape index: {}]   ;;  %s446_s3 = inlined_call_operand.hbm [shape: f32[16,32], index: 3, kind: output, shape index: {}]  }
   0x1   :  { %v27_v0 = vld [vmem:[%s444_s1 + $0x18] sm:$0xff]  ;;  %v26_v1 = vld [vmem:[%s444_s1 + $0x10] sm:$0xff]  ;;  %v22_v2 = vld [vmem:[%s443_s0] sm:$0xff] }
   0x2   :  { %266 = vmatprep.subr.mxu0 %v27_v0  ;;  %v25_v3 = vld [vmem:[%s444_s1 + $0x8] sm:$0xff]  ;;  %274 = vmatprep.mubr.msk.f32.mxu0 %vm19_vm0, %v22_v2  ;;  %v137_v4 = vld [vmem:[%s445_s2 + $0x78] sm:$0xff]  ;;  %v136_v5 = vld [vmem:[%s445_s2 + $0x70] sm:$0xff] }
   0x3   :  { %267 = vmatpush3.msra.mxu0 %v27_v0  ;;  %277 = vmatprep.subr.mxu1 %v137_v4 }
   0x4   :  { %268 = vmatprep.subr.mxu0 %v26_v1 }
   0x5   :  { %8 = vsyncpa [#allocation4], 0  ;;  %269 = vmatpush3.msra.mxu0 %v26_v1  ;;  %v24_v6 = vld [vmem:[%s444_s1] sm:$0xff]  ;;  %278 = vmatpush3.msra.mxu1 %v137_v4  ;;  %v135_v7 = vld [vmem:[%s445_s2 + $0x68] sm:$0xff]  ;;  %v342_v22 = vmov 0.0  }
   0x6   :  { %270 = vmatprep.subr.mxu0 %v25_v3  ;;  %279 = vmatprep.subr.mxu1 %v136_v5  ;;  %v23_v8 = vld [vmem:[%s443_s0 + $0x8] sm:$0xff]  ;;  %v134_v9 = vld [vmem:[%s445_s2 + $0x60] sm:$0xff]  ;;  %v133_v10 = vld [vmem:[%s445_s2 + $0x58] sm:$0xff]  ;;  %21 = vst.msk [vmem:[#allocation2 + $0x8] sm:$0xff] %vm19_vm0, %v342_v22 }
   0x7   :  { %271 = vmatpush3.msra.mxu0 %v25_v3  ;;  %280 = vmatpush3.msra.mxu1 %v136_v5  ;;  %v132_v11 = vld [vmem:[%s445_s2 + $0x50] sm:$0xff]  ;;  %v131_v12 = vld [vmem:[%s445_s2 + $0x48] sm:$0xff]  ;;  %v130_v13 = vld [vmem:[%s445_s2 + $0x40] sm:$0xff]  ;;  %20 = vst.msk [vmem:[#allocation2] sm:$0xff] %vm19_vm0, %v342_v22 }
   0x8   :  { %272 = vmatprep.subr.mxu0 %v24_v6  ;;  %281 = vmatprep.subr.mxu1 %v135_v7  ;;  %v129_v14 = vld [vmem:[%s445_s2 + $0x38] sm:$0xff]  ;;  %v128_v15 = vld [vmem:[%s445_s2 + $0x30] sm:$0xff]  ;;  %v127_v16 = vld [vmem:[%s445_s2 + $0x28] sm:$0xff] }
   0x9   :  { %273 = vmatpush3.msra.mxu0 %v24_v6  ;;  %282 = vmatpush3.msra.mxu1 %v135_v7  ;;  %v126_v17 = vld [vmem:[%s445_s2 + $0x20] sm:$0xff]  ;;  %v125_v18 = vld [vmem:[%s445_s2 + $0x18] sm:$0xff]  ;;  %v124_v19 = vld [vmem:[%s445_s2 + $0x10] sm:$0xff] }
   0xa   :  { %275 = vmatmul.mubr.msk.f32.vlgmr.msra.gmra.mxu0 %vm19_vm0, %v23_v8  ;;  %283 = vmatprep.subr.mxu1 %v134_v9  ;;  %v123_v20 = vld [vmem:[%s445_s2 + $0x8] sm:$0xff]  ;;  %v122_v21 = vld [vmem:[%s445_s2] sm:$0xff]  ;;  %s343_s2 = smov [#allocation3]  }
   0xb   :  { %284 = vmatpush3.msra.mxu1 %v134_v9  ;;  %s229_s27 = sshll.u32 %s343_s2, 4  ;;  %s230_s27 = int_to_ptr.vmem [resolvable:$true] %s229_s27 }
   0xc   :  { %285 = vmatprep.subr.mxu1 %v133_v10  ;;  %s320_s28 = scalar_lea.vmem %s230_s27, 256  ;;  %p325_p1 = scmp.lt.s32.totalorder %s230_s27, %s230_s27 }
   0xd   :  { %286 = vmatpush3.msra.mxu1 %v133_v10  ;;  %v121_v35 = vld [vmem:[#allocation2 + $0x8] sm:$0xff]  ;;  %p321_p0 = scmp.ne.s32.totalorder %s230_s27, %s320_s28  ;;  %p326_p2 = scmp.lt.s32.totalorder %s320_s28, %s320_s28 }
   0xe   :  { %287 = vmatprep.subr.mxu1 %v132_v11  ;;  %v120_v37 = vld [vmem:[#allocation2] sm:$0xff] }
   0xf   :  { %288 = vmatpush3.msra.mxu1 %v132_v11  ;;  %p327_p3 = por %p326_p2, %p325_p1 }
  0x10   :  { %289 = vmatprep.subr.mxu1 %v131_v12 }
  0x11   :  { %290 = vmatpush3.msra.mxu1 %v131_v12  ;;  %p328_p4 = pnand %p327_p3, %p321_p0 }
  0x12   :  { %291 = vmatprep.subr.mxu1 %v130_v13 }
  0x13   :  { %292 = vmatpush3.msra.mxu1 %v130_v13 }
  0x14   :  { %293 = vmatprep.subr.mxu1 %v129_v14 }
  0x15   :  { %294 = vmatpush3.msra.mxu1 %v129_v14 }
  0x16   :  { %295 = vmatprep.subr.mxu1 %v128_v15 }
  0x17   :  { %296 = vmatpush3.msra.mxu1 %v128_v15 }
  0x18   :  { %297 = vmatprep.subr.mxu1 %v127_v16 }
  0x19   :  { %298 = vmatpush3.msra.mxu1 %v127_v16 }
  0x1a   :  { %299 = vmatprep.subr.mxu1 %v126_v17 }
  0x1b   :  { %300 = vmatpush3.msra.mxu1 %v126_v17 }
  0x1c   :  { %301 = vmatprep.subr.mxu1 %v125_v18 }
  0x1d   :  { %302 = vmatpush3.msra.mxu1 %v125_v18 }
  0x1e   :  { %303 = vmatprep.subr.mxu1 %v124_v19 }
  0x1f   :  { %304 = vmatpush3.msra.mxu1 %v124_v19 }
  0x20   :  { %305 = vmatprep.subr.mxu1 %v123_v20 }
  0x21   :  { %306 = vmatpush3.msra.mxu1 %v123_v20 }
  0x22   :  { %307 = vmatprep.subr.mxu1 %v122_v21 }
  0x23   :  { %308 = vmatpush3.msra.mxu1 %v122_v21 }
  0xca   :  { %v276_v23 = vpop.f32.mrf.mxu0 }
  0xcb   :  { %v113_v24 = vmul.f32 0.70710677, %v276_v23  ;;  %v111_v32 = vmul.f32 0.5, %v276_v23 }
  0xcc   :  { %v101_v25 = vpop.f32.mrf.mxu0 }
  0xcd   :  { %316 = verf.f32 %v113_v24  ;;  %v112_v26 = vmul.f32 0.70710677, %v101_v25  ;;  %v110_v30 = vmul.f32 0.5, %v101_v25 }
  0xcf   :  { %318 = verf.f32 %v112_v26 }
  0xda   :  { %v317_v27 = vpop.eup %316 }
  0xdb   :  { %v117_v29 = vadd.f32 1.0, %v317_v27 }
  0xdc   :  { %v319_v28 = vpop.eup %318 }
  0xdd   :  { %v116_v31 = vadd.f32 1.0, %v319_v28  ;;  %v119_v34 = vmul.f32 %v117_v29, %v111_v32 }
  0xdf   :  { %v118_v33 = vmul.f32 %v116_v31, %v110_v30 }
  0xe1   :  { %309 = vmatprep.mubr.f32.mxu1 %v118_v33 }
  0xe2   :  { %310 = vmatmul.mubr.f32.vlgmr.msra.gmra.mxu1 %v119_v34 }
 0x1a2   :  { %v311_v36 = vpop.f32.mrf.mxu1 }
 0x1a3   :  { %v214_v38 = vadd.f32 %v311_v36, %v121_v35 }
 0x1a4   :  { %v204_v39 = vpop.f32.mrf.mxu1 }
 0x1a5   :  { %216 = vst.msk [vmem:[#allocation2 + $0x8] sm:$0xff] %vm19_vm0, %v214_v38  ;;  %v213_v40 = vadd.f32 %v204_v39, %v120_v37 }
 0x1a7   :  { %215 = vst.msk [vmem:[#allocation2] sm:$0xff] %vm19_vm0, %v213_v40 }
 0x1ac   :  { %v221_v41 = vld [vmem:[#allocation2 + $0x8] sm:$0xff] }
 0x1ad   :  { %223 = vst.msk [vmem:[#allocation3 + $0x8] sm:$0xff] %vm19_vm0, %v221_v41 }
 0x1ae   :  { %v220_v42 = vld [vmem:[#allocation2] sm:$0xff] }
 0x1af   :  { %222 = vst.msk [vmem:[#allocation3] sm:$0xff] %vm19_vm0, %v220_v42 }
 0x1b0   :  { %331 = shalt.err (!%p328_p4)
}
 0x1b1   :  { %s344_s29 = smov 128   ;;  %s345_s30 = smov 8  }
 0x1b2   :  { %235 = dma.vmem_to_hbm [thread:$0]  %s230_s27, 256, %s446_s3, [#allocation4], %s344_s29, %s344_s29, %s345_s30  }
 0x1b3   :  { %340 = dma.done.wait [#allocation4], 256  }
 0x1b4   :  { %341 = vsyncadd [#allocation4], 4294967040 }
 0x1b5   :  { %239 = vsyncpa [#allocation4], 1 }

</bundles_post_ra>
